<compile_context>
chip_gen: v7x
topology: tpu7x:2x2x1
jax: 0.10.0
libtpu: 0.0.40
codegen_flags: <defaults>
</compile_context>

<pallas_src>
import math
import functools

import jax
import jax.numpy as jnp
from jax.experimental import pallas as pl
from jax.experimental.pallas import tpu as pltpu  # noqa: F401  (kept for TPU-specific tweaks)

# ----------------------------- model config (small) -----------------------------
DIM = 32          # args.dim
N_HEADS = 4       # args.n_heads
HEAD_DIM = DIM // N_HEADS
HIDDEN = 64       # args.hidden_dim
EPS = 1e-5        # args.norm_eps
BATCH = 2
SEQ = 8


# ----------------------------- Pallas kernel -----------------------------
def _decoder_block_kernel(B, S, D, H, n_heads, head_dim, eps,
                          x_ref, cs_ref, mask_ref, norms_ref,
                          wbig_ref, w2_ref,
                          out_ref):
    BS = B * S
    x = x_ref[...]                                   # (BS, D) f32

    cs = cs_ref[...]                                 # (BS, 2D) f32
    cos = cs[:, :D]
    sin = cs[:, D:]

    norms = norms_ref[...]                           # (2, D) f32

    wbig = wbig_ref[...]                             # (D, 5D + D + 2H) bf16
    wqkv = wbig[:, 0:5 * D]                          # [Wq | Wk | Wv | Wq@P | Wk@P]
    wo = wbig[:, 5 * D:6 * D]                        # Wo
    w13 = wbig[:, 6 * D:]                            # [W1 | W3]

    def rmsnorm(v, w):                               # f32 math
        ms = jnp.mean(v * v, axis=-1, keepdims=True)
        return (v * jax.lax.rsqrt(ms + eps)) * w

    # ---------------- attention branch ----------------
    xn = rmsnorm(x, norms[0:1, :])                   # (BS, D) f32

    # fused QKV (+ pre-rotated Q/K) projection: bf16 operands, f32 MXU accumulation
    qkv = jnp.dot(xn.astype(jnp.bfloat16), wqkv,
                  preferred_element_type=jnp.float32)          # (BS, 5D)

    # RoPE folded into the weights: rot(x) = x*cos + (x @ P)*sin, with Wq@P / Wk@P prefolded.
    q = qkv[:, 0 * D:1 * D] * cos + qkv[:, 3 * D:4 * D] * sin  # (BS, D) f32
    k = qkv[:, 1 * D:2 * D] * cos + qkv[:, 4 * D:5 * D] * sin
    v = qkv[:, 2 * D:3 * D]

    # repack (BS, D) -> (H*B, S, hd): single leading batch dim for the batched einsums.
    def to_heads(t):
        return jnp.concatenate(
            [t[:, h * head_dim:(h + 1) * head_dim].reshape(B, S, head_dim)
             for h in range(n_heads)], axis=0).astype(jnp.bfloat16)

    qh = to_heads(q)                                 # (H*B, S, hd) bf16
    kh = to_heads(k)
    vh = to_heads(v)

    scale = 1.0 / math.sqrt(head_dim)
    s = jnp.einsum('bqd,bkd->bqk', qh, kh,
                   preferred_element_type=jnp.float32) * scale  # (H*B, S, S) f32
    s = s + mask_ref[...][:, None, :]                            # additive key mask (H*B, S)
    m = jnp.max(s, axis=-1, keepdims=True)
    p_attn = jnp.exp(s - m)
    denom = jnp.sum(p_attn, axis=-1, keepdims=True)
    p_attn = p_attn * pl.reciprocal(denom, approx=True)
    # (attention dropout is identity in eval mode)
    o = jnp.einsum('bqk,bkd->bqd', p_attn.astype(jnp.bfloat16), vh,
                   preferred_element_type=jnp.float32)           # (H*B, S, hd) f32

    # reassemble heads -> (BS, D), head-major columns (matches torch transpose+view)
    attn_cat = jnp.concatenate(
        [o[h * B:(h + 1) * B].reshape(BS, head_dim) for h in range(n_heads)], axis=-1)

    attn_out = jnp.dot(attn_cat.astype(jnp.bfloat16), wo,
                       preferred_element_type=jnp.float32)       # (BS, D)
    h_res = x + attn_out                                         # first residual

    # ---------------- feed-forward branch (SwiGLU, fused W1|W3) ----------------
    hn = rmsnorm(h_res, norms[1:2, :])
    gu = jnp.dot(hn.astype(jnp.bfloat16), w13,
                 preferred_element_type=jnp.float32)             # (BS, 2H)
    g = gu[:, :H]
    u = gu[:, H:]
    g = g * jax.nn.sigmoid(g)                                    # SiLU
    ff = jnp.dot((g * u).astype(jnp.bfloat16), w2_ref[...],
                 preferred_element_type=jnp.float32)             # (BS, D)

    out_ref[...] = h_res + ff                                    # second residual


def decoder_block_pallas(x, cossin, mask_hb, params):
    B, S, D = x.shape
    BS = B * S
    wbig = params["wbig"]
    w2 = params["w2"]
    norms = params["norms"]
    H = w2.shape[0]

    kernel = functools.partial(_decoder_block_kernel,
                               B, S, D, H, N_HEADS, HEAD_DIM, EPS)

    out_flat = pl.pallas_call(
        kernel,
        out_shape=jax.ShapeDtypeStruct((BS, D), jnp.float32),
        in_specs=[
            pl.BlockSpec((BS, D), lambda: (0, 0)),          # x (flattened in the wrapper)
            pl.BlockSpec((BS, 2 * D), lambda: (0, 0)),      # packed cos | sin
            pl.BlockSpec(mask_hb.shape, lambda: (0, 0)),    # (H*B, S) additive key mask
            pl.BlockSpec((2, D), lambda: (0, 0)),           # attn_norm | ffn_norm
            pl.BlockSpec(wbig.shape, lambda: (0, 0)),       # [Wq|Wk|Wv|WqP|WkP|Wo|W1|W3] bf16
            pl.BlockSpec(w2.shape, lambda: (0, 0)),         # W2 bf16
        ],
        out_specs=pl.BlockSpec((BS, D), lambda: (0, 0)),
    )(x.reshape(BS, D), cossin, mask_hb, norms, wbig, w2)

    return out_flat.reshape(B, S, D)


# ----------------------------- pure-JAX reference -----------------------------
# Mirrors the kernel's mixed-precision policy (bf16 matmul operands incl. attention, f32
# accumulation, f32 norm/softmax/RoPE) so the tolerance stays tight; structure matches the
# PyTorch module.
def _rope_ref(x, cos, sin):
    # x: (B, S, H, hd); cos/sin: (S, hd//2) -- matches torch.view_as_complex semantics
    xr = x.reshape(*x.shape[:-1], -1, 2)
    xe, xo = xr[..., 0], xr[..., 1]
    c = cos[None, :, None, :]
    s = sin[None, :, None, :]
    oe = xe * c - xo * s
    oo = xe * s + xo * c
    return jnp.stack([oe, oo], axis=-1).reshape(x.shape)


def decoder_block_ref(x, cos_half, sin_half, mask, p):
    B, S, D = x.shape

    def rmsnorm(v, w):
        ms = jnp.mean(v * v, axis=-1, keepdims=True)
        return (v * jax.lax.rsqrt(ms + EPS)) * w

    def mm(a, w):   # bf16 operands, f32 accumulation (same as kernel)
        return jnp.dot(a.astype(jnp.bfloat16), w.astype(jnp.bfloat16),
                       preferred_element_type=jnp.float32)

    xn = rmsnorm(x, p["attn_norm"])
    q = mm(xn, p["wq"]).reshape(B, S, N_HEADS, HEAD_DIM)
    k = mm(xn, p["wk"]).reshape(B, S, N_HEADS, HEAD_DIM)
    v = mm(xn, p["wv"]).reshape(B, S, N_HEADS, HEAD_DIM)
    q = _rope_ref(q, cos_half, sin_half)
    k = _rope_ref(k, cos_half, sin_half)
    q = q.transpose(0, 2, 1, 3).astype(jnp.bfloat16)
    k = k.transpose(0, 2, 1, 3).astype(jnp.bfloat16)
    v = v.transpose(0, 2, 1, 3).astype(jnp.bfloat16)
    scores = jnp.einsum("bhqd,bhkd->bhqk", q, k,
                        preferred_element_type=jnp.float32) / math.sqrt(HEAD_DIM)
    scores = scores + mask[:, None, None, :]
    pa = jax.nn.softmax(scores, axis=-1)
    o = jnp.einsum("bhqk,bhkd->bhqd", pa.astype(jnp.bfloat16), v,
                   preferred_element_type=jnp.float32)
    o = o.transpose(0, 2, 1, 3).reshape(B, S, D)
    h = x + mm(o, p["wo"])

    hn = rmsnorm(h, p["ffn_norm"])
    g = mm(hn, p["w1"])
    g = g * jax.nn.sigmoid(g)
    u = mm(hn, p["w3"])
    return h + mm(g * u, p["w2"])


# ----------------------------- setup / main -----------------------------
def make_params(key):
    ks = jax.random.split(key, 8)

    def lin(k, fan_in, fan_out):
        return jax.random.normal(k, (fan_in, fan_out), jnp.float32) / math.sqrt(fan_in)

    return {
        "wq": lin(ks[0], DIM, DIM),
        "wk": lin(ks[1], DIM, DIM),
        "wv": lin(ks[2], DIM, DIM),
        "wo": lin(ks[3], DIM, DIM),
        "w1": lin(ks[4], DIM, HIDDEN),
        "w3": lin(ks[5], DIM, HIDDEN),
        "w2": lin(ks[6], HIDDEN, DIM),
        "attn_norm": jnp.ones((DIM,), jnp.float32),
        "ffn_norm": jnp.ones((DIM,), jnp.float32),
    }


def make_kernel_params(p):
    # RoPE pair-swap-with-sign matrix: (x @ P)[2i] = -x[2i+1], (x @ P)[2i+1] = x[2i]
    P = jnp.zeros((DIM, DIM), jnp.float32)
    idx = jnp.arange(0, DIM, 2)
    P = P.at[idx, idx + 1].set(1.0)
    P = P.at[idx + 1, idx].set(-1.0)

    wqkv5 = jnp.concatenate(
        [p["wq"], p["wk"], p["wv"], p["wq"] @ P, p["wk"] @ P], axis=1)   # (D, 5D)
    wbig = jnp.concatenate([wqkv5, p["wo"], p["w1"], p["w3"]],
                           axis=1).astype(jnp.bfloat16)                  # (D, 5D+D+2H)
    return {
        "wbig": wbig,
        "w2": p["w2"].astype(jnp.bfloat16),
        "norms": jnp.stack([p["attn_norm"], p["ffn_norm"]], axis=0),     # (2, D)
    }


def make_rope_tables(seq_len):
    theta = 1.0 / (10000.0 ** (jnp.arange(0, HEAD_DIM, 2, dtype=jnp.float32) / HEAD_DIM))
    pos = jnp.arange(seq_len, dtype=jnp.float32)
    angles = pos[:, None] * theta[None, :]                     # (S, hd/2)
    cos_half, sin_half = jnp.cos(angles), jnp.sin(angles)
    # interleave pairs -> (S, hd), then tile across heads -> (S, D)
    cos_full = jnp.tile(jnp.repeat(cos_half, 2, axis=-1), (1, N_HEADS))
    sin_full = jnp.tile(jnp.repeat(sin_half, 2, axis=-1), (1, N_HEADS))
    return cos_half, sin_half, cos_full, sin_full


if __name__ == "__main__":
    key = jax.random.PRNGKey(0)
    k_x, k_p = jax.random.split(key)

    x = jax.random.normal(k_x, (BATCH, SEQ, DIM), jnp.float32)
    ref_params = make_params(k_p)
    kernel_params = make_kernel_params(ref_params)

    cos_half, sin_half, cos_full, sin_full = make_rope_tables(SEQ)
    # packed cos|sin table, tiled over batch: (B*S, 2D)
    cossin = jnp.concatenate([jnp.tile(cos_full, (BATCH, 1)),
                              jnp.tile(sin_full, (BATCH, 1))], axis=1)

    # 2-D additive key-padding mask (B, S): batch 0 masks the last 2 keys
    key_idx = jnp.arange(SEQ)
    valid_len = jnp.array([SEQ - 2, SEQ])
    mask = jnp.where(key_idx[None, :] >= valid_len[:, None], -1e9, 0.0).astype(jnp.float32)
    # expanded to the kernel's (H*B, S) head-major batch ordering (free, wrapper-side)
    mask_hb = jnp.tile(mask, (N_HEADS, 1))

    out = decoder_block_pallas(x, cossin, mask_hb, kernel_params)
    out = jax.block_until_ready(out)

    ref = decoder_block_ref(x, cos_half, sin_half, mask, ref_params)
    assert out.shape == (BATCH, SEQ, DIM)
    max_err = jnp.max(jnp.abs(out - ref))
    assert jnp.allclose(out, ref, atol=2e-2, rtol=2e-2), f"max abs err = {max_err}"

    print("KERNEL_OK")
</pallas_src>

<mosaic_0001>
module attributes {stable_mosaic.version = 11 : i64} {
  func.func @_decoder_block_kernel(%arg0: memref<16x32xf32, #tpu.memory_space<vmem>>, %arg1: memref<16x64xf32, #tpu.memory_space<vmem>>, %arg2: memref<8x8xf32, #tpu.memory_space<vmem>>, %arg3: memref<2x32xf32, #tpu.memory_space<vmem>>, %arg4: memref<32x320xbf16, #tpu.memory_space<vmem>>, %arg5: memref<64x32xbf16, #tpu.memory_space<vmem>>, %arg6: memref<16x32xf32, #tpu.memory_space<vmem>>) attributes {dimension_semantics = [], scalar_prefetch = 0 : i64, scratch_operands = 0 : i64, tpu.core_type = #tpu.core_type<tc>} {
    %c0 = arith.constant 0 : index
    %c0_0 = arith.constant 0 : index
    %0 = vector.load %arg0[%c0, %c0_0] : memref<16x32xf32, #tpu.memory_space<vmem>>, vector<16x32xf32>
    %c0_1 = arith.constant 0 : index
    %c0_2 = arith.constant 0 : index
    %1 = vector.load %arg1[%c0_1, %c0_2] : memref<16x64xf32, #tpu.memory_space<vmem>>, vector<16x64xf32>
    %2 = vector.extract_strided_slice %1 {offsets = [0, 0], sizes = [16, 32], strides = [1, 1]} : vector<16x64xf32> to vector<16x32xf32>
    %3 = vector.extract_strided_slice %1 {offsets = [0, 32], sizes = [16, 32], strides = [1, 1]} : vector<16x64xf32> to vector<16x32xf32>
    %c0_3 = arith.constant 0 : index
    %c0_4 = arith.constant 0 : index
    %4 = vector.load %arg3[%c0_3, %c0_4] : memref<2x32xf32, #tpu.memory_space<vmem>>, vector<2x32xf32>
    %c0_5 = arith.constant 0 : index
    %c0_6 = arith.constant 0 : index
    %5 = vector.load %arg4[%c0_5, %c0_6] : memref<32x320xbf16, #tpu.memory_space<vmem>>, vector<32x320xbf16>
    %6 = vector.extract_strided_slice %5 {offsets = [0, 0], sizes = [32, 160], strides = [1, 1]} : vector<32x320xbf16> to vector<32x160xbf16>
    %7 = vector.extract_strided_slice %5 {offsets = [0, 160], sizes = [32, 32], strides = [1, 1]} : vector<32x320xbf16> to vector<32x32xbf16>
    %8 = vector.extract_strided_slice %5 {offsets = [0, 192], sizes = [32, 128], strides = [1, 1]} : vector<32x320xbf16> to vector<32x128xbf16>
    %9 = vector.extract_strided_slice %4 {offsets = [0, 0], sizes = [1, 32], strides = [1, 1]} : vector<2x32xf32> to vector<1x32xf32>
    %10 = arith.mulf %0, %0 : vector<16x32xf32>
    %cst = arith.constant dense<0.000000e+00> : vector<16xf32>
    %11 = vector.multi_reduction <add>, %10, %cst [1] : vector<16x32xf32> to vector<16xf32>
    %12 = vector.shape_cast %11 : vector<16xf32> to vector<16x1xf32>
    %cst_7 = arith.constant 3.200000e+01 : f32
    %13 = vector.broadcast %cst_7 : f32 to vector<16x1xf32>
    %14 = arith.divf %12, %13 : vector<16x1xf32>
    %cst_8 = arith.constant 9.99999974E-6 : f32
    %15 = vector.broadcast %cst_8 : f32 to vector<16x1xf32>
    %16 = arith.addf %14, %15 : vector<16x1xf32>
    %17 = math.rsqrt %16 : vector<16x1xf32>
    %18 = vector.broadcast %17 : vector<16x1xf32> to vector<16x32xf32>
    %19 = arith.mulf %0, %18 : vector<16x32xf32>
    %20 = vector.broadcast %9 : vector<1x32xf32> to vector<16x32xf32>
    %21 = arith.mulf %19, %20 : vector<16x32xf32>
    %22 = arith.truncf %21 : vector<16x32xf32> to vector<16x32xbf16>
    %cst_9 = arith.constant dense<0.000000e+00> : vector<16x160xf32>
    %23 = tpu.matmul %22, %6, %cst_9 {dimension_numbers = #tpu.dot_dimension_numbers<[1], [0], [0], [1], [0, 0, 1, 1], [], []>} : vector<16x32xbf16>, vector<32x160xbf16>, vector<16x160xf32> -> vector<16x160xf32>
    %24 = vector.extract_strided_slice %23 {offsets = [0, 0], sizes = [16, 32], strides = [1, 1]} : vector<16x160xf32> to vector<16x32xf32>
    %25 = arith.mulf %24, %2 : vector<16x32xf32>
    %26 = vector.extract_strided_slice %23 {offsets = [0, 96], sizes = [16, 32], strides = [1, 1]} : vector<16x160xf32> to vector<16x32xf32>
    %27 = arith.mulf %26, %3 : vector<16x32xf32>
    %28 = arith.addf %25, %27 : vector<16x32xf32>
    %29 = vector.extract_strided_slice %23 {offsets = [0, 32], sizes = [16, 32], strides = [1, 1]} : vector<16x160xf32> to vector<16x32xf32>
    %30 = arith.mulf %29, %2 : vector<16x32xf32>
    %31 = vector.extract_strided_slice %23 {offsets = [0, 128], sizes = [16, 32], strides = [1, 1]} : vector<16x160xf32> to vector<16x32xf32>
    %32 = arith.mulf %31, %3 : vector<16x32xf32>
    %33 = arith.addf %30, %32 : vector<16x32xf32>
    %34 = vector.extract_strided_slice %23 {offsets = [0, 64], sizes = [16, 32], strides = [1, 1]} : vector<16x160xf32> to vector<16x32xf32>
    %35 = vector.extract_strided_slice %28 {offsets = [0, 0], sizes = [16, 8], strides = [1, 1]} : vector<16x32xf32> to vector<16x8xf32>
    %36 = vector.shape_cast %35 : vector<16x8xf32> to vector<2x8x8xf32>
    %37 = vector.extract_strided_slice %28 {offsets = [0, 8], sizes = [16, 8], strides = [1, 1]} : vector<16x32xf32> to vector<16x8xf32>
    %38 = vector.shape_cast %37 : vector<16x8xf32> to vector<2x8x8xf32>
    %39 = vector.extract_strided_slice %28 {offsets = [0, 16], sizes = [16, 8], strides = [1, 1]} : vector<16x32xf32> to vector<16x8xf32>
    %40 = vector.shape_cast %39 : vector<16x8xf32> to vector<2x8x8xf32>
    %41 = vector.extract_strided_slice %28 {offsets = [0, 24], sizes = [16, 8], strides = [1, 1]} : vector<16x32xf32> to vector<16x8xf32>
    %42 = vector.shape_cast %41 : vector<16x8xf32> to vector<2x8x8xf32>
    %43 = tpu.concatenate %36, %38, %40, %42 in 0 : vector<2x8x8xf32>, vector<2x8x8xf32>, vector<2x8x8xf32>, vector<2x8x8xf32> -> vector<8x8x8xf32>
    %44 = arith.truncf %43 : vector<8x8x8xf32> to vector<8x8x8xbf16>
    %45 = vector.extract_strided_slice %33 {offsets = [0, 0], sizes = [16, 8], strides = [1, 1]} : vector<16x32xf32> to vector<16x8xf32>
    %46 = vector.shape_cast %45 : vector<16x8xf32> to vector<2x8x8xf32>
    %47 = vector.extract_strided_slice %33 {offsets = [0, 8], sizes = [16, 8], strides = [1, 1]} : vector<16x32xf32> to vector<16x8xf32>
    %48 = vector.shape_cast %47 : vector<16x8xf32> to vector<2x8x8xf32>
    %49 = vector.extract_strided_slice %33 {offsets = [0, 16], sizes = [16, 8], strides = [1, 1]} : vector<16x32xf32> to vector<16x8xf32>
    %50 = vector.shape_cast %49 : vector<16x8xf32> to vector<2x8x8xf32>
    %51 = vector.extract_strided_slice %33 {offsets = [0, 24], sizes = [16, 8], strides = [1, 1]} : vector<16x32xf32> to vector<16x8xf32>
    %52 = vector.shape_cast %51 : vector<16x8xf32> to vector<2x8x8xf32>
    %53 = tpu.concatenate %46, %48, %50, %52 in 0 : vector<2x8x8xf32>, vector<2x8x8xf32>, vector<2x8x8xf32>, vector<2x8x8xf32> -> vector<8x8x8xf32>
    %54 = arith.truncf %53 : vector<8x8x8xf32> to vector<8x8x8xbf16>
    %55 = vector.extract_strided_slice %34 {offsets = [0, 0], sizes = [16, 8], strides = [1, 1]} : vector<16x32xf32> to vector<16x8xf32>
    %56 = vector.shape_cast %55 : vector<16x8xf32> to vector<2x8x8xf32>
    %57 = vector.extract_strided_slice %34 {offsets = [0, 8], sizes = [16, 8], strides = [1, 1]} : vector<16x32xf32> to vector<16x8xf32>
    %58 = vector.shape_cast %57 : vector<16x8xf32> to vector<2x8x8xf32>
    %59 = vector.extract_strided_slice %34 {offsets = [0, 16], sizes = [16, 8], strides = [1, 1]} : vector<16x32xf32> to vector<16x8xf32>
    %60 = vector.shape_cast %59 : vector<16x8xf32> to vector<2x8x8xf32>
    %61 = vector.extract_strided_slice %34 {offsets = [0, 24], sizes = [16, 8], strides = [1, 1]} : vector<16x32xf32> to vector<16x8xf32>
    %62 = vector.shape_cast %61 : vector<16x8xf32> to vector<2x8x8xf32>
    %63 = tpu.concatenate %56, %58, %60, %62 in 0 : vector<2x8x8xf32>, vector<2x8x8xf32>, vector<2x8x8xf32>, vector<2x8x8xf32> -> vector<8x8x8xf32>
    %64 = arith.truncf %63 : vector<8x8x8xf32> to vector<8x8x8xbf16>
    "tpu.trace_start"() <{level = 10 : i32, message = "bqd,bkd->bqk"}> : () -> ()
    %cst_10 = arith.constant dense<0.000000e+00> : vector<8x8x8xf32>
    %65 = tpu.matmul %44, %54, %cst_10 {dimension_numbers = #tpu.dot_dimension_numbers<[2], [2], [1], [1], [0, 0, 0, 1, 1, 1], [0], [0]>} : vector<8x8x8xbf16>, vector<8x8x8xbf16>, vector<8x8x8xf32> -> vector<8x8x8xf32>
    "tpu.trace_stop"() : () -> ()
    %cst_11 = arith.constant 0.353553385 : f32
    %66 = vector.broadcast %cst_11 : f32 to vector<8x8x8xf32>
    %67 = arith.mulf %65, %66 : vector<8x8x8xf32>
    %c0_12 = arith.constant 0 : index
    %c0_13 = arith.constant 0 : index
    %68 = vector.load %arg2[%c0_12, %c0_13] : memref<8x8xf32, #tpu.memory_space<vmem>>, vector<8x8xf32>
    %69 = vector.shape_cast %68 : vector<8x8xf32> to vector<8x1x8xf32>
    %70 = vector.broadcast %69 : vector<8x1x8xf32> to vector<8x8x8xf32>
    %71 = arith.addf %67, %70 : vector<8x8x8xf32>
    %cst_14 = arith.constant dense<0xFF800000> : vector<8x8xf32>
    %72 = vector.multi_reduction <maximumf>, %71, %cst_14 [2] : vector<8x8x8xf32> to vector<8x8xf32>
    %73 = vector.shape_cast %72 : vector<8x8xf32> to vector<8x8x1xf32>
    %74 = vector.broadcast %73 : vector<8x8x1xf32> to vector<8x8x8xf32>
    %75 = arith.subf %71, %74 : vector<8x8x8xf32>
    %76 = math.exp %75 : vector<8x8x8xf32>
    %cst_15 = arith.constant dense<0.000000e+00> : vector<8x8xf32>
    %77 = vector.multi_reduction <add>, %76, %cst_15 [2] : vector<8x8x8xf32> to vector<8x8xf32>
    %78 = vector.shape_cast %77 : vector<8x8xf32> to vector<8x8x1xf32>
    %79 = tpu.reciprocal %78 {approx = true} : vector<8x8x1xf32> -> vector<8x8x1xf32>
    %80 = vector.broadcast %79 : vector<8x8x1xf32> to vector<8x8x8xf32>
    %81 = arith.mulf %76, %80 : vector<8x8x8xf32>
    %82 = arith.truncf %81 : vector<8x8x8xf32> to vector<8x8x8xbf16>
    "tpu.trace_start"() <{level = 10 : i32, message = "bqk,bkd->bqd"}> : () -> ()
    %cst_16 = arith.constant dense<0.000000e+00> : vector<8x8x8xf32>
    %83 = tpu.matmul %82, %64, %cst_16 {dimension_numbers = #tpu.dot_dimension_numbers<[2], [1], [1], [2], [0, 0, 0, 1, 1, 2], [0], [0]>} : vector<8x8x8xbf16>, vector<8x8x8xbf16>, vector<8x8x8xf32> -> vector<8x8x8xf32>
    "tpu.trace_stop"() : () -> ()
    %84 = vector.extract_strided_slice %83 {offsets = [0, 0, 0], sizes = [2, 8, 8], strides = [1, 1, 1]} : vector<8x8x8xf32> to vector<2x8x8xf32>
    %85 = vector.shape_cast %84 : vector<2x8x8xf32> to vector<16x8xf32>
    %86 = vector.extract_strided_slice %83 {offsets = [2, 0, 0], sizes = [2, 8, 8], strides = [1, 1, 1]} : vector<8x8x8xf32> to vector<2x8x8xf32>
    %87 = vector.shape_cast %86 : vector<2x8x8xf32> to vector<16x8xf32>
    %88 = vector.extract_strided_slice %83 {offsets = [4, 0, 0], sizes = [2, 8, 8], strides = [1, 1, 1]} : vector<8x8x8xf32> to vector<2x8x8xf32>
    %89 = vector.shape_cast %88 : vector<2x8x8xf32> to vector<16x8xf32>
    %90 = vector.extract_strided_slice %83 {offsets = [6, 0, 0], sizes = [2, 8, 8], strides = [1, 1, 1]} : vector<8x8x8xf32> to vector<2x8x8xf32>
    %91 = vector.shape_cast %90 : vector<2x8x8xf32> to vector<16x8xf32>
    %92 = tpu.concatenate %85, %87, %89, %91 in 1 : vector<16x8xf32>, vector<16x8xf32>, vector<16x8xf32>, vector<16x8xf32> -> vector<16x32xf32>
    %93 = arith.truncf %92 : vector<16x32xf32> to vector<16x32xbf16>
    %cst_17 = arith.constant dense<0.000000e+00> : vector<16x32xf32>
    %94 = tpu.matmul %93, %7, %cst_17 {dimension_numbers = #tpu.dot_dimension_numbers<[1], [0], [0], [1], [0, 0, 1, 1], [], []>} : vector<16x32xbf16>, vector<32x32xbf16>, vector<16x32xf32> -> vector<16x32xf32>
    %95 = arith.addf %0, %94 : vector<16x32xf32>
    %96 = vector.extract_strided_slice %4 {offsets = [1, 0], sizes = [1, 32], strides = [1, 1]} : vector<2x32xf32> to vector<1x32xf32>
    %97 = arith.mulf %95, %95 : vector<16x32xf32>
    %cst_18 = arith.constant dense<0.000000e+00> : vector<16xf32>
    %98 = vector.multi_reduction <add>, %97, %cst_18 [1] : vector<16x32xf32> to vector<16xf32>
    %99 = vector.shape_cast %98 : vector<16xf32> to vector<16x1xf32>
    %cst_19 = arith.constant 3.200000e+01 : f32
    %100 = vector.broadcast %cst_19 : f32 to vector<16x1xf32>
    %101 = arith.divf %99, %100 : vector<16x1xf32>
    %cst_20 = arith.constant 9.99999974E-6 : f32
    %102 = vector.broadcast %cst_20 : f32 to vector<16x1xf32>
    %103 = arith.addf %101, %102 : vector<16x1xf32>
    %104 = math.rsqrt %103 : vector<16x1xf32>
    %105 = vector.broadcast %104 : vector<16x1xf32> to vector<16x32xf32>
    %106 = arith.mulf %95, %105 : vector<16x32xf32>
    %107 = vector.broadcast %96 : vector<1x32xf32> to vector<16x32xf32>
    %108 = arith.mulf %106, %107 : vector<16x32xf32>
    %109 = arith.truncf %108 : vector<16x32xf32> to vector<16x32xbf16>
    %cst_21 = arith.constant dense<0.000000e+00> : vector<16x128xf32>
    %110 = tpu.matmul %109, %8, %cst_21 {dimension_numbers = #tpu.dot_dimension_numbers<[1], [0], [0], [1], [0, 0, 1, 1], [], []>} : vector<16x32xbf16>, vector<32x128xbf16>, vector<16x128xf32> -> vector<16x128xf32>
    %111 = vector.extract_strided_slice %110 {offsets = [0, 0], sizes = [16, 64], strides = [1, 1]} : vector<16x128xf32> to vector<16x64xf32>
    %112 = vector.extract_strided_slice %110 {offsets = [0, 64], sizes = [16, 64], strides = [1, 1]} : vector<16x128xf32> to vector<16x64xf32>
    %113 = arith.negf %111 : vector<16x64xf32>
    %114 = math.exp %113 : vector<16x64xf32>
    %cst_22 = arith.constant 1.000000e+00 : f32
    %115 = vector.broadcast %cst_22 : f32 to vector<16x64xf32>
    %116 = arith.addf %115, %114 : vector<16x64xf32>
    %117 = arith.divf %115, %116 : vector<16x64xf32>
    %118 = arith.mulf %111, %117 : vector<16x64xf32>
    %119 = arith.mulf %118, %112 : vector<16x64xf32>
    %120 = arith.truncf %119 : vector<16x64xf32> to vector<16x64xbf16>
    %c0_23 = arith.constant 0 : index
    %c0_24 = arith.constant 0 : index
    %121 = vector.load %arg5[%c0_23, %c0_24] : memref<64x32xbf16, #tpu.memory_space<vmem>>, vector<64x32xbf16>
    %cst_25 = arith.constant dense<0.000000e+00> : vector<16x32xf32>
    %122 = tpu.matmul %120, %121, %cst_25 {dimension_numbers = #tpu.dot_dimension_numbers<[1], [0], [0], [1], [0, 0, 1, 1], [], []>} : vector<16x64xbf16>, vector<64x32xbf16>, vector<16x32xf32> -> vector<16x32xf32>
    %123 = arith.addf %95, %122 : vector<16x32xf32>
    %c0_26 = arith.constant 0 : index
    %c0_27 = arith.constant 0 : index
    %124 = vector.load %arg6[%c0_26, %c0_27] : memref<16x32xf32, #tpu.memory_space<vmem>>, vector<16x32xf32>
    tpu.vector_store %arg6[%c0_26, %c0_27], %123 {strides = array<i32>} : memref<16x32xf32, #tpu.memory_space<vmem>>, vector<16x32xf32>,
    return
  }
}

</mosaic_0001>

<bundles_post_ra>
// kernel: tpu_custom_call.1
= control target key start
LH: loop header
LB: loop body
LE: loop exit
PB: predicated region body
PF: predicated region fallthrough
CT: control target
= control target key end

     0   :  { %11 = vsyncpa [#allocation3], 0  ;;  %s2482_s0 = inlined_call_operand.hbm [shape: f32[16,32], index: 0, kind: input, shape index: {}]   ;;  %s2483_s1 = inlined_call_operand.hbm [shape: f32[16,64], index: 1, kind: input, shape index: {}]   ;;  %s2484_s2 = inlined_call_operand.hbm [shape: f32[8,8], index: 2, kind: input, shape index: {}]   ;;  %s2485_s3 = inlined_call_operand.vmem [shape: f32[2,32], index: 3, kind: input, shape index: {}]   ;;  %s2486_s4 = inlined_call_operand.vmem [shape: bf16[32,320], index: 4, kind: input, shape index: {}]   ;;  %s2487_s5 = inlined_call_operand.vmem [shape: bf16[64,32], index: 5, kind: input, shape index: {}]   ;;  %s2488_s6 = inlined_call_operand.hbm [shape: f32[16,32], index: 6, kind: output, shape index: {}]  }
   0x1   :  { %12 = vsyncpa [#allocation6], 0 }
   0x2   :  { %13 = vsyncpa [#allocation4], 0  ;;  %s2024_s21 = smov [#allocation5]   ;;  %s2025_s23 = smov [#allocation2]  }
   0x3   :  { %s31_s22 = sshll.u32 %s2024_s21, 4  ;;  %s19_s24 = sshll.u32 %s2025_s23, 4  ;;  %s32_s22 = int_to_ptr.vmem [resolvable:$true] %s31_s22  ;;  %s2077_s24 = int_to_ptr.vmem [resolvable:$true] %s19_s24 }
   0x4   :  { %s1930_s27 = scalar_lea.hbm %s2483_s1, 256 }
   0x5   :  { %p1931_p0 = scmp.ne.s32.totalorder %s2483_s1, %s1930_s27  ;;  %p1934_p1 = scmp.lt.u32.totalorder %s1930_s27, %s2483_s1 }
   0x7   :  { %p1936_p2 = pnand %p1934_p1, %p1931_p0 }
   0x9   :  { %1939 = shalt.err (!%p1936_p2)
}
   0xa   :  { %s1940_s8 = scalar_lea.vmem %s32_s22, 256  ;;  %p1945_p4 = scmp.lt.s32.totalorder %s32_s22, %s32_s22 }
   0xb   :  { %p1941_p3 = scmp.ne.s32.totalorder %s32_s22, %s1940_s8  ;;  %p1946_p5 = scmp.lt.s32.totalorder %s1940_s8, %s1940_s8 }
   0xd   :  { %p1947_p6 = por %p1946_p5, %p1945_p4 }
   0xf   :  { %p1948_p7 = pnand %p1947_p6, %p1941_p3 }
  0x11   :  { %1951 = shalt.err (!%p1948_p7)
}
  0x12   :  { %s2026_s9 = smov 128   ;;  %s2027_s10 = smov 8  }
  0x13   :  { %37 = dma.hbm_to_vmem [thread:$0]  %s2483_s1, 256, %s32_s22, [#allocation6], %s2026_s9, %s2026_s9, %s2027_s10  }
  0x14   :  { %s1952_s15 = scalar_lea.hbm %s2482_s0, 256 }
  0x15   :  { %p1953_p8 = scmp.ne.s32.totalorder %s2482_s0, %s1952_s15  ;;  %p1956_p9 = scmp.lt.u32.totalorder %s1952_s15, %s2482_s0 }
  0x17   :  { %p1958_p10 = pnand %p1956_p9, %p1953_p8 }
  0x19   :  { %1961 = shalt.err (!%p1958_p10)
}
  0x1a   :  { %s1962_s20 = scalar_lea.vmem %s2077_s24, 256  ;;  %p1967_p12 = scmp.lt.s32.totalorder %s2077_s24, %s2077_s24 }
  0x1b   :  { %p1963_p11 = scmp.ne.s32.totalorder %s2077_s24, %s1962_s20  ;;  %p1968_p13 = scmp.lt.s32.totalorder %s1962_s20, %s1962_s20 }
  0x1d   :  { %p1969_p0 = por %p1968_p13, %p1967_p12 }
  0x1f   :  { %p1970_p1 = pnand %p1969_p0, %p1963_p11 }
  0x21   :  { %1973 = shalt.err (!%p1970_p1)
}
  0x22   :  { %25 = dma.hbm_to_vmem [thread:$0]  %s2482_s0, 256, %s2077_s24, [#allocation3], %s2026_s9, %s2026_s9, %s2027_s10  }
  0x23   :  { %s2028_s22 = smov [#allocation7]   ;;  %s1974_s27 = scalar_lea.hbm %s2484_s2, 128 }
  0x24   :  { %s44_s23 = sshll.u32 %s2028_s22, 4  ;;  %p1975_p2 = scmp.ne.s32.totalorder %s2484_s2, %s1974_s27  ;;  %s45_s23 = int_to_ptr.vmem [resolvable:$true] %s44_s23 }
  0x25   :  { %p1978_p3 = scmp.lt.u32.totalorder %s1974_s27, %s2484_s2 }
  0x27   :  { %p1980_p4 = pnand %p1978_p3, %p1975_p2 }
  0x29   :  { %1983 = shalt.err (!%p1980_p4)
}
  0x2a   :  { %s1984_s8 = scalar_lea.vmem %s45_s23, 128  ;;  %p1989_p6 = scmp.lt.s32.totalorder %s45_s23, %s45_s23 }
  0x2b   :  { %p1985_p5 = scmp.ne.s32.totalorder %s45_s23, %s1984_s8  ;;  %p1990_p7 = scmp.lt.s32.totalorder %s1984_s8, %s1984_s8 }
  0x2d   :  { %p1991_p8 = por %p1990_p7, %p1989_p6 }
  0x2f   :  { %p1992_p9 = pnand %p1991_p8, %p1985_p5 }
  0x31   :  { %1995 = shalt.err (!%p1992_p9)
}
  0x32   :  { %47 = dma.hbm_to_vmem [thread:$0]  %s2484_s2, 128, %s45_s23, [#allocation6]  }
  0x33   :  { %2018 = dma.done.wait [#allocation3], 256  }
  0x34   :  { %2019 = vsyncadd [#allocation3], 4294967040 }
  0x35   :  { %2020 = dma.done.wait [#allocation6], 384  }
  0x36   :  { %2021 = vsyncadd [#allocation6], 4294966912  ;;  %v64_v0 = vld [vmem:[#allocation2] sm:$0xff]  ;;  %vm79_vm0 = vcmask 261120   ;;  %v65_v1 = vld [vmem:[#allocation2 + $0x8] sm:$0xff]  ;;  %v2029_v9 = vmov 0   ;;  %v95_v18 = vlaneseq }
  0x37   :  { %v77_v2 = vmul.f32 %v64_v0, %v64_v0  ;;  %v78_v3 = vmul.f32 %v65_v1, %v65_v1  ;;  %v2131_v6 = vld [vmem:[%s2486_s4 + $0x4] ss:$12 sps:$4 sm:$0xff]   ;;  %v1867_v7 = vld [vmem:[%s2486_s4] ss:$12 sps:$4 sm:$0xff]   ;;  %v2139_v8 = vld [vmem:[%s2486_s4 + $0x1c] ss:$12 sps:$4 sm:$0xff]   ;;  %157 = vmatprep.mubr.bf16.mxu0 %v2029_v9 }
  0x38   :  { %125 = vmatprep.subr.bf16.mxu0 %v2131_v6  ;;  %v1870_v10 = vld [vmem:[%s2486_s4 + $0x18] ss:$12 sps:$4 sm:$0xff]   ;;  %v2146_v11 = vld [vmem:[#allocation5] sm:$0xff]  ;;  %s2030_s18 = smov 96   ;;  %s2031_s19 = smov 32   ;;  %v2158_v20 = vshrl.u32 %v95_v18, 7 }
  0x39   :  { %v80_v4 = vsel %vm79_vm0, %v77_v2, 0.0  ;;  %v83_v5 = vsel %vm79_vm0, %v78_v3, 0.0  ;;  %126 = vmatpush1.bf16.msra.mxu0 %v1867_v7  ;;  %198 = vrot.lane.b32.xlu1 %v2146_v11, %s2030_s18  ;;  %v2152_v12 = vld [vmem:[#allocation5 + $0x8] sm:$0xff]  ;;  %v68_v23 = vld [vmem:[%s2485_s3] sm:$0x3]  ;;  %s2032_s21 = smov 64  }
  0x3a   :  { %81 = vadd.xlane.f32.xlu0 %v80_v4  ;;  %127 = vmatprep.subr.bf16.mxu0 %v2139_v8  ;;  %v2161_v21 = vsub.s32 0, %v2158_v20  ;;  %v2033_v48 = vmov 0.0   ;;  %s2034_s22 = smov 120   ;;  %vm2035_vm1 = vmmov 0   ;;  %s2036_s23 = smov 112   ;;  %vm303_vm2 = vcmask 64512  }
  0x3b   :  { %1663 = vmatprep.subr.bf16.mxu1 %v2033_v48  ;;  %1665 = vmatprep.mubr.msk.bf16.mxu1 %vm2035_vm1, %v2033_v48  ;;  %s2037_s25 = smov 104   ;;  %vm902_vm3 = vcmask 1043456   ;;  %s2039_s26 = smov 16   ;;  %vm1315_vm4 = vcmask 130048   ;;  %vm1318_vm5 = vcmask 195584   ;;  %vm1415_vm6 = vcmask 523264  }
  0x3c   :  { %v98_v25 = vrot.slane %v68_v23, %v2161_v21  ;;  %s2040_s27 = smov 24  }
  0x3d   :  { %128 = vmatpush1.bf16.msra.mxu0 %v1870_v10  ;;  %200 = vrot.lane.b32.xlu1 %v2152_v12, %s2030_s18 }
  0x3e   :  { %84 = vadd.xlane.f32.xlu0 %v83_v5  ;;  %1669 = vmatprep.subr.bf16.mxu0 %v2033_v48 }
  0x41   :  { %192 = vrot.lane.b32.xlu1 %v2152_v12, %s2031_s19 }
  0x54   :  { %190 = vrot.lane.b32.xlu0 %v2146_v11, %s2031_s19 }
  0xab   :  { %v199_v31 = vpop.permute.xlu1 %198 }
  0xaf   :  { %v201_v38 = vpop.permute.xlu1 %200 }
  0xb3   :  { %v193_v40 = vpop.permute.xlu1 %192 }
  0xc7   :  { %v82_v13 = vpop.xlane.xlu0 %81 }
  0xc8   :  { %v87_v14 = vmul.f32 0.03125, %v82_v13 }
  0xca   :  { %v89_v15 = vadd.f32 1e-05, %v87_v14 }
  0xcb   :  { %v85_v16 = vpop.xlane.xlu0 %84 }
  0xcc   :  { %1878 = vrsqrt.f32 %v89_v15  ;;  %v88_v17 = vmul.f32 0.03125, %v85_v16 }
  0xce   :  { %v90_v19 = vadd.f32 1e-05, %v88_v17 }
  0xcf   :  { %v191_v41 = vpop.permute.xlu0 %190 }
  0xd0   :  { %1880 = vrsqrt.f32 %v90_v19 }
  0xd6   :  { %v1879_v22 = vpop.eup %1878 }
  0xd7   :  { %v93_v24 = vmul.f32 %v1879_v22, %v64_v0 }
  0xd9   :  { %v99_v28 = vmul.f32 %v98_v25, %v93_v24 }
  0xda   :  { %v1881_v26 = vpop.eup %1880 }
  0xdb   :  { %v94_v27 = vmul.f32 %v1881_v26, %v65_v1 }
  0xdd   :  { %v100_v29 = vmul.f32 %v98_v25, %v94_v27 }
  0xdf   :  { %v101_v30 = vpack.c.bf16 %v100_v29, %v99_v28 }
  0xe1   :  { %1592 = vmatmul.mubr.msk.bf16.vlgmr.msra.gmra.mrb[0].mxu0 %vm79_vm0, %v101_v30 }
  0xe2   :  { %1671 = vmatprep.mubr.msk.bf16.mxu0 %vm2035_vm1, %v2033_v48 }
 0x1b4   :  { %v2168_v32 = vpop.f32.mrb[0].mxu0 }
 0x1b5   :  { %v161_v33 = vpop.f32.mrb[1].mxu0  ;;  %v196_v43 = vmul.f32 %v191_v41, %v2168_v32  ;;  %v168_v62 = vmul.f32 %v2168_v32, %v2146_v11  ;;  %v292_v24 = vpack.c.bf16 %v2168_v32, %v2168_v32 }
 0x1b6   :  { %v204_v34 = vmul.f32 %v199_v31, %v161_v33  ;;  %v2170_v35 = vpop.f32.mrb[2].mxu0 }
 0x1b7   :  { %v165_v36 = vpop.f32.mrb[3].mxu0  ;;  %v2174_v37 = vpack.i.bf16 %v2170_v35, %v2168_v32  ;;  %v197_v44 = vmul.f32 %v193_v40, %v2170_v35  ;;  %v169_v63 = vmul.f32 %v2170_v35, %v2152_v12 }
 0x1b8   :  { %208 = vrot.lane.b32.xlu1 %v204_v34, %s2031_s19  ;;  %v205_v39 = vmul.f32 %v201_v38, %v165_v36 }
 0x1bc   :  { %210 = vrot.lane.b32.xlu1 %v205_v39, %s2031_s19 }
 0x1c0   :  { %172 = vrot.lane.b32.xlu1 %v2146_v11, %s2032_s21 }
 0x1c4   :  { %174 = vrot.lane.b32.xlu1 %v2152_v12, %s2032_s21 }
 0x22a   :  { %v209_v42 = vpop.permute.xlu1 %208 }
 0x22b   :  { %v214_v46 = vadd.f32 %v209_v42, %v196_v43 }
 0x22d   :  { %v264_v54 = vpack.c.bf16 %v214_v46, %v214_v46 }
 0x22e   :  { %v211_v45 = vpop.permute.xlu1 %210 }
 0x22f   :  { %v215_v47 = vadd.f32 %v211_v45, %v197_v44 }
 0x231   :  { %v1805_v49 = vpack.i.bf16 %v215_v47, %v214_v46  ;;  %v265_v55 = vpack.c.bf16 %v215_v47, %v215_v47 }
 0x232   :  { %v173_v50 = vpop.permute.xlu1 %172 }
 0x233   :  { %v178_v51 = vmul.f32 %v173_v50, %v2168_v32  ;;  %1806 = vrot.lane.b32.xlu1 %v1805_v49, %s2034_s22 }
 0x235   :  { %182 = vrot.lane.b32.xlu0 %v178_v51, %s2031_s19 }
 0x236   :  { %v175_v52 = vpop.permute.xlu1 %174 }
 0x237   :  { %v179_v53 = vmul.f32 %v175_v52, %v2170_v35 }
 0x239   :  { %1811 = vrot.lane.b32.xlu0 %v1805_v49, %s2036_s23  ;;  %184 = vrot.lane.b32.xlu1 %v179_v53, %s2031_s19 }
 0x23d   :  { %1816 = vrot.lane.b32.xlu1 %v1805_v49, %s2037_s25  ;;  %301 = vrot.lane.b32.xlu0 %v264_v54, %s2030_s18 }
 0x241   :  { %351 = vrot.lane.b32.xlu1 %v265_v55, %s2030_s18 }
 0x2a5   :  { %v1807_v56 = vpop.permute.xlu1 %1806 }
 0x2a6   :  { %v1809_v57 = vunpack.i.h.bf16 %v1807_v56  ;;  %v1808_v58 = vunpack.i.l.bf16 %v1807_v56 }
 0x2a7   :  { %v183_v59 = vpop.permute.xlu0 %182 }
 0x2a8   :  { %v267_v60 = vpack.c.bf16 %v1809_v57, %v1809_v57  ;;  %v266_v61 = vpack.c.bf16 %v1808_v58, %v1808_v58  ;;  %v188_v2 = vadd.f32 %v183_v59, %v168_v62  ;;  %v2038_v58 = vmov 1966171168   ;;  %v701_v62 = vld [vmem:[#allocation7] sm:$0xff] }
 0x2a9   :  { %v705_v59 = vunpack.c.l.s4 %v2038_v58 }
 0x2aa   :  { %449 = vrot.lane.b32.xlu1 %v267_v60, %s2030_s18  ;;  %400 = vrot.lane.b32.xlu0 %v266_v61, %s2030_s18  ;;  %v236_v19 = vpack.c.bf16 %v188_v2, %v188_v2 }
 0x2ab   :  { %v185_v0 = vpop.permute.xlu1 %184  ;;  %v1812_v1 = vpop.permute.xlu0 %1811  ;;  %v706_v60 = vunpack.c.0.s8 %v705_v59 }
 0x2ac   :  { %v189_v3 = vadd.f32 %v185_v0, %v169_v63  ;;  %v1813_v4 = vunpack.i.l.bf16 %v1812_v1  ;;  %v1814_v5 = vunpack.i.h.bf16 %v1812_v1 }
 0x2ad   :  { %v709_v61 = vsub.s32 %v706_v60, %v2158_v20 }
 0x2ae   :  { %v268_v7 = vpack.c.bf16 %v1813_v4, %v1813_v4  ;;  %v1820_v9 = vpack.i.bf16 %v189_v3, %v188_v2  ;;  %v269_v14 = vpack.c.bf16 %v1814_v5, %v1814_v5  ;;  %v237_v23 = vpack.c.bf16 %v189_v3, %v189_v3 }
 0x2af   :  { %v1817_v10 = vpop.permute.xlu1 %1816  ;;  %v302_v13 = vpop.permute.xlu0 %301  ;;  %v710_v63 = vrot.slane %v701_v62, %v709_v61 }
 0x2b0   :  { %1821 = vrot.lane.b32.xlu0 %v1820_v9, %s2034_s22  ;;  %498 = vrot.lane.b32.xlu1 %v268_v7, %s2030_s18  ;;  %v308_v11 = vsel %vm303_vm2, %v302_v13, 0  ;;  %v1818_v12 = vunpack.i.l.bf16 %v1817_v10  ;;  %v1819_v15 = vunpack.i.h.bf16 %v1817_v10 }
 0x2b1   :  { %1664 = vmatpush3.bf16.xpose.msra.mxu1 %v308_v11  ;;  %v726_v0 = vrot.slane %v710_v63, %v709_v61  ;;  %v718_v1 = vcombine.high %v710_v63, %v710_v63 }
 0x2b2   :  { %1675 = vmatprep.subr.bf16.mxu1 %v2033_v48  ;;  %v270_v18 = vpack.c.bf16 %v1818_v12, %v1818_v12  ;;  %v271_v22 = vpack.c.bf16 %v1819_v15, %v1819_v15 }
 0x2b3   :  { %v352_v16 = vpop.permute.xlu1 %351  ;;  %v755_v2 = vrot.slane %v726_v0, %v2161_v21  ;;  %v740_v3 = vrot.slane %v718_v1, %v709_v61 }
 0x2b4   :  { %v357_v17 = vsel %vm303_vm2, %v352_v16, 0  ;;  %547 = vrot.lane.b32.xlu0 %v269_v14, %s2030_s18  ;;  %1826 = vrot.lane.b32.xlu1 %v1820_v9, %s2036_s23 }
 0x2b5   :  { %1670 = vmatpush3.bf16.xpose.msra.mxu0 %v357_v17  ;;  %v759_v11 = vrot.slane %v740_v3, %v2161_v21 }
 0x2b6   :  { %1681 = vmatprep.subr.bf16.mxu0 %v2033_v48 }
 0x2b8   :  { %1666 = vmatmul.mubr.msk.bf16.vlgmr.msra.gmra.mrb[0].mxu1 %vm303_vm2, %v236_v19  ;;  %596 = vrot.lane.b32.xlu0 %v270_v18, %s2030_s18 }
 0x2b9   :  { %645 = vrot.lane.b32.xlu1 %v271_v22, %s2030_s18  ;;  %1677 = vmatprep.mubr.msk.bf16.mxu1 %vm2035_vm1, %v2033_v48 }
 0x2bc   :  { %1672 = vmatmul.mubr.msk.bf16.vlgmr.msra.gmra.mrb[4].mxu0 %vm303_vm2, %v237_v23  ;;  %1831 = vrot.lane.b32.xlu0 %v1820_v9, %s2037_s25  ;;  %v703_v23 = vcombine.high %v701_v62, %v701_v62 }
 0x2bd   :  { %1841 = vrot.lane.b32.xlu1 %v2174_v37, %s2036_s23  ;;  %1683 = vmatprep.mubr.msk.bf16.mxu0 %vm2035_vm1, %v2033_v48 }
 0x2c0   :  { %1836 = vrot.lane.b32.xlu0 %v2174_v37, %s2034_s22 }
 0x2c1   :  { %1846 = vrot.lane.b32.xlu1 %v2174_v37, %s2037_s25 }
 0x2c5   :  { %897 = vrot.lane.b32.xlu1 %v292_v24, %s2032_s21  ;;  %v748_v24 = vcombine.high %v726_v0, %v726_v0 }
 0x31c   :  { %v450_v25 = vpop.permute.xlu1 %449  ;;  %v401_v26 = vpop.permute.xlu0 %400 }
 0x31d   :  { %v455_v27 = vsel %vm303_vm2, %v450_v25, 0  ;;  %v406_v28 = vsel %vm303_vm2, %v401_v26, 0  ;;  %v750_v25 = vcombine.high %v740_v3, %v740_v3  ;;  %v717_v26 = vrot.slane %v703_v23, %v709_v61 }
 0x31e   :  { %1676 = vmatpush3.bf16.xpose.msra.mxu1 %v406_v28  ;;  %1682 = vmatpush3.bf16.xpose.msra.mxu0 %v455_v27  ;;  %v763_v27 = vrot.slane %v748_v24, %v2161_v21 }
 0x31f   :  { %1687 = vmatprep.subr.bf16.mxu1 %v2033_v48  ;;  %1693 = vmatprep.subr.bf16.mxu0 %v2033_v48  ;;  %v767_v28 = vrot.slane %v750_v25, %v2161_v21 }
 0x322   :  { %v1822_v29 = vpop.permute.xlu0 %1821  ;;  %v499_v30 = vpop.permute.xlu1 %498 }
 0x323   :  { %v1824_v31 = vunpack.i.h.bf16 %v1822_v29  ;;  %v1823_v33 = vunpack.i.l.bf16 %v1822_v29  ;;  %v504_v38 = vsel %vm303_vm2, %v499_v30, 0  ;;  %v719_v29 = vcombine.high %v717_v26, %v717_v26 }
 0x325   :  { %v239_v34 = vpack.c.bf16 %v1824_v31, %v1824_v31  ;;  %v238_v32 = vpack.c.bf16 %v1823_v33, %v1823_v33 }
 0x326   :  { %v548_v36 = vpop.permute.xlu0 %547  ;;  %v1827_v37 = vpop.permute.xlu1 %1826 }
 0x327   :  { %v553_v39 = vsel %vm303_vm2, %v548_v36, 0  ;;  %1678 = vmatmul.mubr.msk.bf16.vlgmr.msra.gmra.mrb[4].mxu1 %vm303_vm2, %v238_v32  ;;  %1684 = vmatmul.mubr.msk.bf16.vlgmr.msra.gmra.mrb[8].mxu0 %vm303_vm2, %v239_v34  ;;  %v1829_v40 = vunpack.i.h.bf16 %v1827_v37  ;;  %v1828_v41 = vunpack.i.l.bf16 %v1827_v37 }
 0x328   :  { %1688 = vmatpush3.bf16.xpose.msra.mxu1 %v504_v38  ;;  %1694 = vmatpush3.bf16.xpose.msra.mxu0 %v553_v39 }
 0x329   :  { %1689 = vmatprep.mubr.msk.bf16.mxu1 %vm2035_vm1, %v2033_v48  ;;  %1695 = vmatprep.mubr.msk.bf16.mxu0 %vm2035_vm1, %v2033_v48  ;;  %v241_v44 = vpack.c.bf16 %v1829_v40, %v1829_v40  ;;  %v240_v45 = vpack.c.bf16 %v1828_v41, %v1828_v41 }
 0x32a   :  { %v597_v42 = vpop.permute.xlu0 %596  ;;  %1699 = vmatprep.subr.bf16.mxu1 %v2033_v48  ;;  %1705 = vmatprep.subr.bf16.mxu0 %v2033_v48 }
 0x32b   :  { %v646_v43 = vpop.permute.xlu1 %645  ;;  %v602_v47 = vsel %vm303_vm2, %v597_v42, 0 }
 0x32c   :  { %v651_v49 = vsel %vm303_vm2, %v646_v43, 0  ;;  %v747_v43 = vrot.slane %v719_v29, %v709_v61 }
 0x32e   :  { %v1832_v46 = vpop.permute.xlu0 %1831  ;;  %v751_v1 = vcombine.high %v747_v43, %v747_v43 }
 0x32f   :  { %v2247_v50 = vpop.permute.xlu1 %1841  ;;  %1690 = vmatmul.mubr.msk.bf16.vlgmr.msra.gmra.mrb[8].mxu1 %vm303_vm2, %v240_v45  ;;  %1696 = vmatmul.mubr.msk.bf16.vlgmr.msra.gmra.mrb[12].mxu0 %vm303_vm2, %v241_v44  ;;  %v1834_v51 = vunpack.i.h.bf16 %v1832_v46  ;;  %v1833_v52 = vunpack.i.l.bf16 %v1832_v46  ;;  %v733_v44 = vrot.slane %v717_v26, %v709_v61 }
 0x330   :  { %1700 = vmatpush3.bf16.xpose.msra.mxu1 %v602_v47  ;;  %1706 = vmatpush3.bf16.xpose.msra.mxu0 %v651_v49  ;;  %v775_v47 = vrot.slane %v747_v43, %v2161_v21 }
 0x331   :  { %1701 = vmatprep.mubr.msk.bf16.mxu1 %vm2035_vm1, %v2033_v48  ;;  %1707 = vmatprep.mubr.msk.bf16.mxu0 %vm2035_vm1, %v2033_v48  ;;  %v243_v54 = vpack.c.bf16 %v1834_v51, %v1834_v51  ;;  %v242_v55 = vpack.c.bf16 %v1833_v52, %v1833_v52  ;;  %v771_v49 = vrot.slane %v733_v44, %v2161_v21 }
 0x332   :  { %1711 = vmatprep.subr.bf16.mxu1 %v2033_v48  ;;  %1717 = vmatprep.subr.bf16.mxu0 %v2033_v48  ;;  %v749_v0 = vcombine.high %v733_v44, %v733_v44  ;;  %v1837_v25 = vpop.permute.xlu0 %1836 }
 0x333   :  { %v2257_v53 = vpop.permute.xlu1 %1846  ;;  %v1838_v26 = vunpack.i.l.bf16 %v1837_v25 }
 0x337   :  { %v898_v56 = vpop.permute.xlu1 %897  ;;  %1702 = vmatmul.mubr.msk.bf16.vlgmr.msra.gmra.mrb[12].mxu1 %vm303_vm2, %v242_v55  ;;  %1708 = vmatmul.mubr.msk.bf16.vlgmr.msra.gmra.mrb[16].mxu0 %vm303_vm2, %v243_v54 }
 0x338   :  { %v904_v57 = vsel %vm902_vm3, %v898_v56, 0  ;;  %1713 = vmatprep.mubr.msk.bf16.mxu1 %vm2035_vm1, %v2033_v48  ;;  %1719 = vmatprep.mubr.msk.bf16.mxu0 %vm2035_vm1, %v2033_v48 }
 0x339   :  { %1712 = vmatpush3.bf16.msra.mxu1 %v904_v57 }
 0x33a   :  { %1723 = vmatprep.subr.bf16.mxu1 %v2033_v48 }
 0x38b   :  { %v344_v4 = vpop.f32.mrb[0].mxu1 }
 0x38c   :  { %v693_v5 = vmul.f32 0.35355338, %v344_v4  ;;  %v1667_v7 = vpop.f32.mrb[1].mxu1  ;;  %v779_v4 = vrot.slane %v749_v0, %v2161_v21 }
 0x38d   :  { %v347_v9 = vpop.f32.mrb[2].mxu1 }
 0x38e   :  { %v1668_v10 = vpop.f32.mrb[3].mxu1  ;;  %v2269_v13 = vadd.f32 %v755_v2, %v693_v5  ;;  %v783_v5 = vrot.slane %v751_v1, %v2161_v21  ;;  %v293_v21 = vpack.c.bf16 %v2170_v35, %v2170_v35 }
 0x38f   :  { %v393_v14 = vpop.f32.mrb[4].mxu0 }
 0x390   :  { %v694_v12 = vmul.f32 0.35355338, %v393_v14  ;;  %v1673_v15 = vpop.f32.mrb[5].mxu0  ;;  %v800_v16 = vsel %vm303_vm2, %v2269_v13, -inf }
 0x391   :  { %v396_v17 = vpop.f32.mrb[6].mxu0  ;;  %801 = vmax.xlane.f32.xlu1 %v800_v16 }
 0x392   :  { %v1674_v18 = vpop.f32.mrb[7].mxu0  ;;  %v2274_v19 = vadd.f32 %v759_v11, %v694_v12 }
 0x394   :  { %v803_v22 = vsel %vm303_vm2, %v2274_v19, -inf }
 0x395   :  { %804 = vmax.xlane.f32.xlu0 %v803_v22 }
 0x3fa   :  { %v442_v30 = vpop.f32.mrb[4].mxu1  ;;  %v491_v31 = vpop.f32.mrb[8].mxu0 }
 0x3fb   :  { %v695_v33 = vmul.f32 0.35355338, %v442_v30  ;;  %v696_v34 = vmul.f32 0.35355338, %v491_v31  ;;  %v1679_v32 = vpop.f32.mrb[5].mxu1  ;;  %v1685_v36 = vpop.f32.mrb[9].mxu0 }
 0x3fc   :  { %v445_v37 = vpop.f32.mrb[6].mxu1  ;;  %v494_v38 = vpop.f32.mrb[10].mxu0  ;;  %v1839_v32 = vunpack.i.h.bf16 %v1837_v25 }
 0x3fd   :  { %v1680_v39 = vpop.f32.mrb[7].mxu1  ;;  %v1686_v40 = vpop.f32.mrb[11].mxu0  ;;  %v2280_v41 = vadd.f32 %v763_v27, %v695_v33  ;;  %v2282_v42 = vadd.f32 %v767_v28, %v696_v34  ;;  %v294_v27 = vpack.c.bf16 %v1838_v26, %v1838_v26 }
 0x3fe   :  { %v295_v36 = vpack.c.bf16 %v1839_v32, %v1839_v32  ;;  %v1844_v40 = vunpack.i.h.bf16 %v2247_v50 }
 0x3ff   :  { %v806_v45 = vsel %vm303_vm2, %v2280_v41, -inf  ;;  %v809_v46 = vsel %vm303_vm2, %v2282_v42, -inf }
 0x400   :  { %807 = vmax.xlane.f32.xlu0 %v806_v45  ;;  %810 = vmax.xlane.f32.xlu1 %v809_v46  ;;  %v297_v43 = vpack.c.bf16 %v1844_v40, %v1844_v40 }
 0x402   :  { %v540_v51 = vpop.f32.mrb[8].mxu1  ;;  %v589_v52 = vpop.f32.mrb[12].mxu0 }
 0x403   :  { %v697_v54 = vmul.f32 0.35355338, %v540_v51  ;;  %v698_v55 = vmul.f32 0.35355338, %v589_v52  ;;  %v1691_v56 = vpop.f32.mrb[9].mxu1  ;;  %v1697_v57 = vpop.f32.mrb[13].mxu0 }
 0x404   :  { %v543_v58 = vpop.f32.mrb[10].mxu1  ;;  %v592_v59 = vpop.f32.mrb[14].mxu0 }
 0x405   :  { %v1692_v60 = vpop.f32.mrb[11].mxu1  ;;  %v1698_v61 = vpop.f32.mrb[15].mxu0  ;;  %v2290_v62 = vadd.f32 %v775_v47, %v698_v55  ;;  %v796_v63 = vadd.f32 %v771_v49, %v697_v54 }
 0x407   :  { %v815_v2 = vsel %vm303_vm2, %v2290_v62, -inf  ;;  %v812_v3 = vsel %vm303_vm2, %v796_v63, -inf }
 0x408   :  { %816 = vmax.xlane.f32.xlu1 %v815_v2  ;;  %813 = vmax.xlane.f32.xlu0 %v812_v3  ;;  %v1843_v3 = vunpack.i.l.bf16 %v2247_v50 }
 0x40a   :  { %v638_v7 = vpop.f32.mrb[12].mxu1  ;;  %v687_v9 = vpop.f32.mrb[16].mxu0 }
 0x40b   :  { %v699_v10 = vmul.f32 0.35355338, %v638_v7  ;;  %v700_v11 = vmul.f32 0.35355338, %v687_v9  ;;  %v1703_v14 = vpop.f32.mrb[13].mxu1  ;;  %v1709_v12 = vpop.f32.mrb[17].mxu0 }
 0x40c   :  { %v641_v15 = vpop.f32.mrb[14].mxu1  ;;  %v690_v16 = vpop.f32.mrb[18].mxu0 }
 0x40d   :  { %v1704_v17 = vpop.f32.mrb[15].mxu1  ;;  %v1710_v18 = vpop.f32.mrb[19].mxu0  ;;  %v798_v22 = vadd.f32 %v779_v4, %v699_v10  ;;  %v2297_v23 = vadd.f32 %v783_v5, %v700_v11  ;;  %v296_v4 = vpack.c.bf16 %v1843_v3, %v1843_v3  ;;  %v1849_v5 = vunpack.i.h.bf16 %v2257_v53 }
 0x40f   :  { %v818_v24 = vsel %vm303_vm2, %v798_v22, -inf  ;;  %v821_v31 = vsel %vm303_vm2, %v2297_v23, -inf  ;;  %v299_v7 = vpack.c.bf16 %v1849_v5, %v1849_v5 }
 0x410   :  { %819 = vmax.xlane.f32.xlu0 %v818_v24 }
 0x419   :  { %996 = vrot.lane.b32.xlu1 %v294_v27, %s2032_s21  ;;  %v1848_v27 = vunpack.i.l.bf16 %v2257_v53 }
 0x41e   :  { %v802_v28 = vpop.xlane.xlu1 %801 }
 0x41f   :  { %v824_v29 = vsub.f32 %v2269_v13, %v802_v28 }
 0x421   :  { %v832_v30 = vmul.f32 1.442695, %v824_v29 }
 0x422   :  { %v805_v35 = vpop.xlane.xlu0 %804 }
 0x423   :  { %1882 = vpow2.f32 %v832_v30  ;;  %v825_v37 = vsub.f32 %v2274_v19, %v805_v35 }
 0x425   :  { %v834_v13 = vmul.f32 1.442695, %v825_v37 }
 0x426   :  { %947 = vrot.lane.b32.xlu0 %v293_v21, %s2032_s21  ;;  %v298_v21 = vpack.c.bf16 %v1848_v27, %v1848_v27 }
 0x427   :  { %1884 = vpow2.f32 %v834_v13 }
 0x42d   :  { %v2307_v33 = vpop.eup %1882 }
 0x42e   :  { %v848_v34 = vsel %vm303_vm2, %v2307_v33, 0.0 }
 0x431   :  { %v2313_v38 = vpop.eup %1884 }
 0x432   :  { %v851_v39 = vsel %vm303_vm2, %v2313_v38, 0.0 }
 0x43d   :  { %822 = vmax.xlane.f32.xlu1 %v821_v31 }
 0x445   :  { %849 = vadd.xlane.f32.xlu0 %v848_v34 }
 0x44e   :  { %1045 = vrot.lane.b32.xlu1 %v295_v36, %s2032_s21 }
 0x472   :  { %852 = vadd.xlane.f32.xlu1 %v851_v39 }
 0x483   :  { %1143 = vrot.lane.b32.xlu1 %v297_v43, %s2032_s21 }
 0x48d   :  { %v808_v44 = vpop.xlane.xlu0 %807  ;;  %v811_v45 = vpop.xlane.xlu1 %810 }
 0x48e   :  { %v826_v46 = vsub.f32 %v2280_v41, %v808_v44  ;;  %v827_v47 = vsub.f32 %v2282_v42, %v811_v45 }
 0x490   :  { %v836_v19 = vmul.f32 1.442695, %v826_v46  ;;  %v838_v49 = vmul.f32 1.442695, %v827_v47 }
 0x492   :  { %1886 = vpow2.f32 %v836_v19 }
 0x493   :  { %1888 = vpow2.f32 %v838_v49 }
 0x495   :  { %v814_v51 = vpop.xlane.xlu0 %813  ;;  %v817_v9 = vpop.xlane.xlu1 %816 }
 0x496   :  { %v828_v52 = vsub.f32 %v796_v63, %v814_v51  ;;  %v829_v10 = vsub.f32 %v2290_v62, %v817_v9 }
 0x498   :  { %v840_v54 = vmul.f32 1.442695, %v828_v52  ;;  %v842_v11 = vmul.f32 1.442695, %v829_v10 }
 0x499   :  { %v997_v14 = vpop.permute.xlu1 %996 }
 0x49a   :  { %1890 = vpow2.f32 %v840_v54  ;;  %v1002_v26 = vsel %vm902_vm3, %v997_v14, 0 }
 0x49c   :  { %v2321_v55 = vpop.eup %1886 }
 0x49d   :  { %v820_v56 = vpop.xlane.xlu0 %819  ;;  %v854_v57 = vsel %vm303_vm2, %v2321_v55, 0.0  ;;  %v2325_v58 = vpop.eup %1888 }
 0x49e   :  { %v830_v59 = vsub.f32 %v798_v22, %v820_v56  ;;  %855 = vadd.xlane.f32.xlu0 %v854_v57  ;;  %v857_v60 = vsel %vm303_vm2, %v2325_v58, 0.0 }
 0x4a0   :  { %v844_v41 = vmul.f32 1.442695, %v830_v59 }
 0x4a1   :  { %v948_v42 = vpop.permute.xlu0 %947 }
 0x4a2   :  { %1892 = vpow2.f32 %v844_v41  ;;  %v953_v61 = vsel %vm902_vm3, %v948_v42, 0  ;;  %858 = vadd.xlane.f32.xlu0 %v857_v60 }
 0x4a3   :  { %1718 = vmatpush3.bf16.msra.mxu0 %v953_v61  ;;  %1894 = vpow2.f32 %v842_v11 }
 0x4a4   :  { %1729 = vmatprep.subr.bf16.mxu0 %v2033_v48  ;;  %v2331_v63 = vpop.eup %1890 }
 0x4a5   :  { %v860_v0 = vsel %vm303_vm2, %v2331_v63, 0.0 }
 0x4a7   :  { %861 = vadd.xlane.f32.xlu1 %v860_v0 }
 0x4ac   :  { %v2335_v1 = vpop.eup %1892 }
 0x4ad   :  { %v866_v2 = vsel %vm303_vm2, %v2335_v1, 0.0  ;;  %v2345_v17 = vpop.eup %1894 }
 0x4ae   :  { %867 = vadd.xlane.f32.xlu1 %v866_v2  ;;  %v863_v18 = vsel %vm303_vm2, %v2345_v17, 0.0 }
 0x4b8   :  { %1094 = vrot.lane.b32.xlu0 %v296_v4, %s2032_s21 }
 0x4bf   :  { %1241 = vrot.lane.b32.xlu1 %v299_v7, %s2032_s21 }
 0x4ca   :  { %v823_v12 = vpop.xlane.xlu1 %822 }
 0x4cb   :  { %v831_v15 = vsub.f32 %v2297_v23, %v823_v12 }
 0x4cd   :  { %v846_v16 = vmul.f32 1.442695, %v831_v15 }
 0x4ce   :  { %v1046_v28 = vpop.permute.xlu1 %1045 }
 0x4cf   :  { %1896 = vpow2.f32 %v846_v16  ;;  %v1051_v34 = vsel %vm902_vm3, %v1046_v28, 0 }
 0x4d2   :  { %v850_v50 = vpop.xlane.xlu0 %849 }
 0x4d3   :  { %1898 = vrcp.f32 %v850_v50 }
 0x4d7   :  { %864 = vadd.xlane.f32.xlu0 %v863_v18 }
 0x4d9   :  { %v2349_v22 = vpop.eup %1896 }
 0x4da   :  { %v869_v62 = vsel %vm303_vm2, %v2349_v22, 0.0 }
 0x4db   :  { %870 = vadd.xlane.f32.xlu0 %v869_v62 }
 0x4dd   :  { %v1899_v24 = vpop.eup %1898 }
 0x4de   :  { %v880_v25 = vmul.f32 %v1899_v24, %v2307_v33 }
 0x4e0   :  { %v888_v23 = vpack.c.bf16 %v880_v25, %v880_v25 }
 0x4e2   :  { %1714 = vmatmul.mubr.msk.bf16.vlgmr.msra.gmra.mrb[16].mxu1 %vm303_vm2, %v888_v23 }
 0x4e3   :  { %1724 = vmatpush3.bf16.msra.mxu1 %v1002_v26  ;;  %1725 = vmatprep.mubr.msk.bf16.mxu1 %vm2035_vm1, %v2033_v48 }
 0x4e4   :  { %1735 = vmatprep.subr.bf16.mxu1 %v2033_v48 }
 0x4f1   :  { %1192 = vrot.lane.b32.xlu0 %v298_v21, %s2032_s21 }
 0x4f5   :  { %1322 = vrot.lane.b32.xlu0 %v2131_v6, %s2030_s18 }
 0x4ff   :  { %v853_v29 = vpop.xlane.xlu1 %852 }
 0x500   :  { %1900 = vrcp.f32 %v853_v29 }
 0x503   :  { %v1144_v36 = vpop.permute.xlu1 %1143 }
 0x504   :  { %v1149_v47 = vsel %vm902_vm3, %v1144_v36, 0 }
 0x50a   :  { %v1901_v30 = vpop.eup %1900 }
 0x50b   :  { %v881_v31 = vmul.f32 %v1901_v30, %v2313_v38 }
 0x50d   :  { %v889_v33 = vpack.c.bf16 %v881_v31, %v881_v31 }
 0x50f   :  { %1720 = vmatmul.mubr.msk.bf16.vlgmr.msra.gmra.mrb[20].mxu0 %vm303_vm2, %v889_v33 }
 0x510   :  { %1730 = vmatpush3.bf16.msra.mxu0 %v1051_v34  ;;  %1731 = vmatprep.mubr.msk.bf16.mxu0 %vm2035_vm1, %v2033_v48 }
 0x511   :  { %1741 = vmatprep.subr.bf16.mxu0 %v2033_v48 }
 0x52b   :  { %v856_v53 = vpop.xlane.xlu0 %855 }
 0x52c   :  { %1902 = vrcp.f32 %v856_v53 }
 0x52f   :  { %v859_v32 = vpop.xlane.xlu0 %858 }
 0x530   :  { %1904 = vrcp.f32 %v859_v32 }
 0x533   :  { %v1095_v38 = vpop.permute.xlu0 %1094 }
 0x534   :  { %v862_v35 = vpop.xlane.xlu1 %861  ;;  %v1100_v44 = vsel %vm902_vm3, %v1095_v38, 0 }
 0x535   :  { %1906 = vrcp.f32 %v862_v35 }
 0x536   :  { %v1903_v37 = vpop.eup %1902 }
 0x537   :  { %v882_v13 = vmul.f32 %v1903_v37, %v2321_v55 }
 0x539   :  { %v890_v39 = vpack.c.bf16 %v882_v13, %v882_v13 }
 0x53a   :  { %v1905_v40 = vpop.eup %1904 }
 0x53b   :  { %v883_v43 = vmul.f32 %v1905_v40, %v2325_v58  ;;  %1726 = vmatmul.mubr.msk.bf16.vlgmr.msra.gmra.mrb[20].mxu1 %vm303_vm2, %v890_v39  ;;  %v868_v51 = vpop.xlane.xlu1 %867  ;;  %v1872_v40 = vld [vmem:[%s2486_s4 + $0x8] ss:$12 sps:$4 sm:$0xff]  }
 0x53c   :  { %1736 = vmatpush3.bf16.msra.mxu1 %v1100_v44  ;;  %1737 = vmatprep.mubr.msk.bf16.mxu1 %vm2035_vm1, %v2033_v48  ;;  %1908 = vrcp.f32 %v868_v51 }
 0x53d   :  { %v891_v45 = vpack.c.bf16 %v883_v43, %v883_v43  ;;  %1747 = vmatprep.subr.bf16.mxu1 %v2033_v48 }
 0x53f   :  { %v1907_v46 = vpop.eup %1906  ;;  %1732 = vmatmul.mubr.msk.bf16.vlgmr.msra.gmra.mrb[24].mxu0 %vm303_vm2, %v891_v45  ;;  %v1242_v60 = vpop.permute.xlu1 %1241 }
 0x540   :  { %v884_v19 = vmul.f32 %v1907_v46, %v2331_v63  ;;  %1742 = vmatpush3.bf16.msra.mxu0 %v1149_v47  ;;  %1743 = vmatprep.mubr.msk.bf16.mxu0 %vm2035_vm1, %v2033_v48  ;;  %v1247_v0 = vsel %vm902_vm3, %v1242_v60, 0 }
 0x541   :  { %1753 = vmatprep.subr.bf16.mxu0 %v2033_v48 }
 0x542   :  { %v892_v49 = vpack.c.bf16 %v884_v19, %v884_v19 }
 0x544   :  { %1738 = vmatmul.mubr.msk.bf16.vlgmr.msra.gmra.mrb[24].mxu1 %vm303_vm2, %v892_v49 }
 0x545   :  { %1749 = vmatprep.mubr.msk.bf16.mxu1 %vm2035_vm1, %v2033_v48 }
 0x546   :  { %v1909_v54 = vpop.eup %1908 }
 0x547   :  { %v886_v56 = vmul.f32 %v1909_v54, %v2335_v1 }
 0x549   :  { %v894_v41 = vpack.c.bf16 %v886_v56, %v886_v56 }
 0x564   :  { %v865_v52 = vpop.xlane.xlu0 %864 }
 0x565   :  { %1910 = vrcp.f32 %v865_v52 }
 0x568   :  { %v871_v55 = vpop.xlane.xlu0 %870 }
 0x569   :  { %1912 = vrcp.f32 %v871_v55 }
 0x56c   :  { %v1193_v57 = vpop.permute.xlu0 %1192 }
 0x56d   :  { %v1198_v58 = vsel %vm902_vm3, %v1193_v57, 0 }
 0x56e   :  { %1748 = vmatpush3.bf16.msra.mxu1 %v1198_v58 }
 0x56f   :  { %v1911_v59 = vpop.eup %1910  ;;  %1759 = vmatprep.subr.bf16.mxu1 %v2033_v48 }
 0x570   :  { %v885_v42 = vmul.f32 %v1911_v59, %v2345_v17  ;;  %v1323_v12 = vpop.permute.xlu0 %1322 }
 0x571   :  { %1750 = vmatmul.mubr.msk.bf16.vlgmr.msra.gmra.mrb[28].mxu1 %vm303_vm2, %v894_v41 }
 0x572   :  { %v893_v61 = vpack.c.bf16 %v885_v42, %v885_v42  ;;  %1763 = vmatprep.mubr.msk.bf16.mxu1 %vm2035_vm1, %v2033_v48  ;;  %1760 = vmatpush3.bf16.msra.mxu1 %v1323_v12  ;;  %v1873_v12 = vld [vmem:[%s2486_s4 + $0x20] ss:$12 sps:$4 sm:$0xff]  }
 0x573   :  { %v1913_v63 = vpop.eup %1912  ;;  %1761 = vmatprep.subr.bf16.mxu1 %v2033_v48 }
 0x574   :  { %1744 = vmatmul.mubr.msk.bf16.vlgmr.msra.gmra.mrb[28].mxu0 %vm303_vm2, %v893_v61  ;;  %v887_v1 = vmul.f32 %v1913_v63, %v2349_v22  ;;  %v1926_v63 = vld [vmem:[#allocation2] sm:$0xff] }
 0x575   :  { %1754 = vmatpush3.bf16.msra.mxu0 %v1247_v0  ;;  %1755 = vmatprep.mubr.msk.bf16.mxu0 %vm2035_vm1, %v2033_v48 }
 0x576   :  { %1767 = vmatprep.subr.bf16.mxu0 %v2033_v48  ;;  %v895_v2 = vpack.c.bf16 %v887_v1, %v887_v1 }
 0x57c   :  { %1756 = vmatmul.mubr.msk.bf16.vlgmr.msra.gmra.mrb[32].mxu0 %vm303_vm2, %v895_v2 }
 0x57d   :  { %1771 = vmatprep.mubr.msk.bf16.mxu0 %vm2035_vm1, %v2033_v48 }
 0x5b5   :  { %v940_v3 = vpop.f32.mrb[16].mxu1 }
 0x5b6   :  { %v1715_v4 = vpop.f32.mrb[17].mxu1 }
 0x5b7   :  { %v943_v5 = vpop.f32.mrb[18].mxu1 }
 0x5b8   :  { %v1716_v7 = vpop.f32.mrb[19].mxu1 }
 0x5e2   :  { %v989_v9 = vpop.f32.mrb[20].mxu0 }
 0x5e3   :  { %v1721_v10 = vpop.f32.mrb[21].mxu0 }
 0x5e4   :  { %v992_v11 = vpop.f32.mrb[22].mxu0 }
 0x5e5   :  { %v1722_v14 = vpop.f32.mrb[23].mxu0 }
 0x5e6   :  { %v1928_v14 = vld [vmem:[%s2486_s4 + $0x1c] ss:$12 sps:$4 sm:$0xff]  }
 0x60e   :  { %v1038_v15 = vpop.f32.mrb[20].mxu1 }
 0x60f   :  { %v1727_v16 = vpop.f32.mrb[21].mxu1 }
 0x610   :  { %v1041_v50 = vpop.f32.mrb[22].mxu1 }
 0x611   :  { %v1728_v17 = vpop.f32.mrb[23].mxu1 }
 0x612   :  { %v1087_v18 = vpop.f32.mrb[24].mxu0 }
 0x613   :  { %v1850_v22 = vpack.i.bf16 %v1087_v18, %v1038_v15  ;;  %v1733_v62 = vpop.f32.mrb[25].mxu0 }
 0x614   :  { %v1090_v24 = vpop.f32.mrb[26].mxu0 }
 0x615   :  { %v1734_v25 = vpop.f32.mrb[27].mxu0  ;;  %1851 = vrot.lane.b32.xlu1 %v1850_v22, %s2027_s10 }
 0x617   :  { %v1136_v23 = vpop.f32.mrb[24].mxu1 }
 0x618   :  { %v1739_v26 = vpop.f32.mrb[25].mxu1 }
 0x619   :  { %v1139_v27 = vpop.f32.mrb[26].mxu1 }
 0x61a   :  { %v1740_v21 = vpop.f32.mrb[27].mxu1  ;;  %v1929_v27 = vld [vmem:[%s2485_s3] sm:$0x3] }
 0x644   :  { %v1234_v28 = vpop.f32.mrb[28].mxu1 }
 0x645   :  { %v1751_v29 = vpop.f32.mrb[29].mxu1 }
 0x646   :  { %v1237_v30 = vpop.f32.mrb[30].mxu1 }
 0x647   :  { %v1185_v31 = vpop.f32.mrb[28].mxu0  ;;  %v1752_v33 = vpop.f32.mrb[31].mxu1 }
 0x648   :  { %v1855_v34 = vpack.i.bf16 %v1185_v31, %v1136_v23  ;;  %v1745_v53 = vpop.f32.mrb[29].mxu0  ;;  %v1392_v23 = vsub.s32 1, %v2158_v20  ;;  %v1874_v20 = vld [vmem:[%s2487_s5] sm:$0xff]  }
 0x649   :  { %v1188_v32 = vpop.f32.mrb[30].mxu0  ;;  %v1875_v53 = vld [vmem:[%s2487_s5 + $0x8] sm:$0xff]  }
 0x64a   :  { %v1746_v36 = vpop.f32.mrb[31].mxu0  ;;  %1856 = vrot.lane.b32.xlu0 %v1855_v34, %s2039_s26  ;;  %v1393_v21 = vrot.slane %v1929_v27, %v1392_v23  ;;  %v1876_v32 = vld [vmem:[%s2487_s5 + $0x10] sm:$0xff]  }
 0x64b   :  { %v1877_v36 = vld [vmem:[%s2487_s5 + $0x18] sm:$0xff]   ;;  %s2041_s5 = smov [#allocation8]  }
 0x64c   :  { %s1575_s17 = sshll.u32 %s2041_s5, 4  ;;  %s1576_s17 = int_to_ptr.vmem [resolvable:$true] %s1575_s17 }
 0x64d   :  { %p2001_p11 = scmp.lt.s32.totalorder %s1576_s17, %s1576_s17 }
 0x64e   :  { %1324 = vrot.lane.b32.xlu0 %v2139_v8, %s2030_s18  ;;  %s1996_s18 = scalar_lea.vmem %s1576_s17, 256 }
 0x64f   :  { %v1283_v35 = vpop.f32.mrb[32].mxu0  ;;  %p1997_p10 = scmp.ne.s32.totalorder %s1576_s17, %s1996_s18  ;;  %p2002_p12 = scmp.lt.s32.totalorder %s1996_s18, %s1996_s18 }
 0x650   :  { %v1860_v37 = vpack.i.bf16 %v1283_v35, %v1234_v28  ;;  %v1757_v13 = vpop.f32.mrb[33].mxu0 }
 0x651   :  { %v1286_v38 = vpop.f32.mrb[34].mxu0  ;;  %p2003_p13 = por %p2002_p12, %p2001_p11 }
 0x652   :  { %v1758_v39 = vpop.f32.mrb[35].mxu0  ;;  %1861 = vrot.lane.b32.xlu1 %v1860_v37, %s2040_s27  ;;  %1407 = vrot.lane.b32.xlu0 %v2131_v6, %s2032_s21 }
 0x653   :  { %p2004_p0 = pnand %p2003_p13, %p1997_p10 }
 0x656   :  { %1409 = vrot.lane.b32.xlu1 %v1872_v40, %s2032_s21 }
 0x687   :  { %v1852_v44 = vpop.permute.xlu1 %1851 }
 0x688   :  { %v1854_v8 = vunpack.i.h.bf16 %v1852_v44  ;;  %v1853_v46 = vunpack.i.l.bf16 %v1852_v44 }
 0x68a   :  { %v1314_v51 = vsel %vm303_vm2, %v989_v9, %v1854_v8  ;;  %v1313_v52 = vsel %vm303_vm2, %v940_v3, %v1853_v46  ;;  %v1927_v3 = vld [vmem:[#allocation2 + $0x8] sm:$0xff] }
 0x6bc   :  { %v1857_v43 = vpop.permute.xlu0 %1856 }
 0x6bd   :  { %v1859_v47 = vunpack.i.h.bf16 %v1857_v43  ;;  %v1858_v19 = vunpack.i.l.bf16 %v1857_v43 }
 0x6bf   :  { %v1317_v55 = vsel %vm1315_vm4, %v1314_v51, %v1859_v47  ;;  %v1316_v56 = vsel %vm1315_vm4, %v1313_v52, %v1858_v19 }
 0x6c0   :  { %v1325_v45 = vpop.permute.xlu0 %1324 }
 0x6c1   :  { %1762 = vmatpush3.bf16.msra.mxu1 %v1325_v45 }
 0x6c2   :  { %1775 = vmatprep.subr.bf16.mxu1 %v2033_v48 }
 0x6c4   :  { %v1862_v49 = vpop.permute.xlu1 %1861  ;;  %v1408_v41 = vpop.permute.xlu0 %1407 }
 0x6c5   :  { %v1864_v6 = vunpack.i.h.bf16 %v1862_v49  ;;  %v1863_v54 = vunpack.i.l.bf16 %v1862_v49 }
 0x6c7   :  { %v1320_v57 = vsel %vm1318_vm5, %v1317_v55, %v1864_v6  ;;  %v1319_v58 = vsel %vm1318_vm5, %v1316_v56, %v1863_v54 }
 0x6c8   :  { %v1321_v59 = vpack.c.bf16 %v1320_v57, %v1319_v58  ;;  %v1410_v42 = vpop.permute.xlu1 %1409 }
 0x6c9   :  { %v1416_v60 = vsel %vm1415_vm6, %v1408_v41, %v1410_v42 }
 0x6ca   :  { %1764 = vmatmul.mubr.msk.bf16.vlgmr.msra.gmra.mrb[32].mxu1 %vm79_vm0, %v1321_v59  ;;  %1768 = vmatpush3.bf16.msra.mxu0 %v1416_v60 }
 0x6cb   :  { %1783 = vmatprep.mubr.msk.bf16.mxu1 %vm2035_vm1, %v2033_v48  ;;  %1769 = vmatprep.subr.bf16.mxu0 %v2033_v48 }
 0x6cc   :  { %1776 = vmatpush3.bf16.msra.mxu1 %v1874_v20 }
 0x6cd   :  { %1777 = vmatprep.subr.bf16.mxu1 %v2033_v48 }
 0x6d0   :  { %1778 = vmatpush3.bf16.msra.mxu1 %v1875_v53 }
 0x6d1   :  { %1779 = vmatprep.subr.bf16.mxu1 %v2033_v48 }
 0x6d4   :  { %1780 = vmatpush3.bf16.msra.mxu1 %v1876_v32 }
 0x6d5   :  { %1781 = vmatprep.subr.bf16.mxu1 %v2033_v48 }
 0x6d8   :  { %1782 = vmatpush3.bf16.msra.mxu1 %v1877_v36 }
 0x79d   :  { %v1365_v61 = vpop.f32.mrb[32].mxu1 }
 0x79e   :  { %v2419_v0 = vadd.f32 %v1926_v63, %v1365_v61  ;;  %v1765_v1 = vpop.f32.mrb[33].mxu1 }
 0x79f   :  { %v1368_v2 = vpop.f32.mrb[34].mxu1 }
 0x7a0   :  { %v2421_v4 = vadd.f32 %v1927_v3, %v1368_v2  ;;  %v1766_v5 = vpop.f32.mrb[35].mxu1  ;;  %v1374_v7 = vmul.f32 %v2419_v0, %v2419_v0 }
 0x7a2   :  { %v1376_v9 = vsel %vm79_vm0, %v1374_v7, 0.0  ;;  %v1375_v10 = vmul.f32 %v2421_v4, %v2421_v4 }
 0x7a3   :  { %1377 = vadd.xlane.f32.xlu1 %v1376_v9 }
 0x7a4   :  { %v1379_v11 = vsel %vm79_vm0, %v1375_v10, 0.0 }
 0x7a5   :  { %1380 = vadd.xlane.f32.xlu0 %v1379_v11 }
 0x7b4   :  { %1411 = vrot.lane.b32.xlu1 %v1928_v14, %s2032_s21 }
 0x7bb   :  { %1413 = vrot.lane.b32.xlu0 %v1873_v12, %s2032_s21 }
 0x830   :  { %v1378_v15 = vpop.xlane.xlu1 %1377 }
 0x831   :  { %v1382_v16 = vmul.f32 0.03125, %v1378_v15 }
 0x832   :  { %v1381_v50 = vpop.xlane.xlu0 %1380 }
 0x833   :  { %v1384_v17 = vadd.f32 1e-05, %v1382_v16  ;;  %v1383_v18 = vmul.f32 0.03125, %v1381_v50 }
 0x834   :  { %v1412_v22 = vpop.permute.xlu1 %1411 }
 0x835   :  { %1914 = vrsqrt.f32 %v1384_v17  ;;  %v1385_v62 = vadd.f32 1e-05, %v1383_v18 }
 0x836   :  { %v1414_v24 = vpop.permute.xlu0 %1413 }
 0x837   :  { %1916 = vrsqrt.f32 %v1385_v62  ;;  %v1417_v25 = vsel %vm1415_vm6, %v1412_v22, %v1414_v24 }
 0x838   :  { %1770 = vmatpush3.bf16.msra.mxu0 %v1417_v25 }
 0x83f   :  { %v1915_v26 = vpop.eup %1914 }
 0x840   :  { %v1388_v28 = vmul.f32 %v1915_v26, %v2419_v0 }
 0x841   :  { %v1917_v29 = vpop.eup %1916 }
 0x842   :  { %v1389_v30 = vmul.f32 %v1917_v29, %v2421_v4  ;;  %v1394_v31 = vmul.f32 %v1393_v21, %v1388_v28 }
 0x844   :  { %v1395_v33 = vmul.f32 %v1393_v21, %v1389_v30 }
 0x846   :  { %v1396_v34 = vpack.c.bf16 %v1395_v33, %v1394_v31 }
 0x848   :  { %1772 = vmatmul.mubr.msk.bf16.vlgmr.msra.gmra.mrb[36].mxu0 %vm79_vm0, %v1396_v34 }
 0x91b   :  { %v1457_v35 = vpop.f32.mrb[36].mxu0 }
 0x91c   :  { %1480 = vrot.lane.b32.xlu1 %v1457_v35, %s2032_s21  ;;  %v1773_v37 = vpop.f32.mrb[37].mxu0  ;;  %v1613_v39 = vmul.f32 -1.442695, %v1457_v35 }
 0x91d   :  { %v1460_v13 = vpop.f32.mrb[38].mxu0 }
 0x91e   :  { %1482 = vrot.lane.b32.xlu0 %v1460_v13, %s2032_s21  ;;  %v1774_v38 = vpop.f32.mrb[39].mxu0  ;;  %v1614_v40 = vmul.f32 -1.442695, %v1460_v13  ;;  %1918 = vpow2.f32 %v1613_v39 }
 0x920   :  { %1920 = vpow2.f32 %v1614_v40 }
 0x928   :  { %v1919_v43 = vpop.eup %1918 }
 0x929   :  { %v1470_v48 = vadd.f32 1.0, %v1919_v43 }
 0x92a   :  { %v1921_v44 = vpop.eup %1920 }
 0x92b   :  { %v1471_v45 = vadd.f32 1.0, %v1921_v44  ;;  %1922 = vrcp.f32 %v1470_v48 }
 0x92d   :  { %1924 = vrcp.f32 %v1471_v45 }
 0x935   :  { %v1923_v8 = vpop.eup %1922 }
 0x936   :  { %v1476_v19 = vmul.f32 %v1923_v8, %v1457_v35 }
 0x937   :  { %v1925_v46 = vpop.eup %1924 }
 0x938   :  { %v1477_v49 = vmul.f32 %v1925_v46, %v1460_v13 }
 0x98e   :  { %v1481_v47 = vpop.permute.xlu1 %1480 }
 0x98f   :  { %v1486_v52 = vmul.f32 %v1481_v47, %v1476_v19 }
 0x990   :  { %v1483_v51 = vpop.permute.xlu0 %1482 }
 0x991   :  { %v1487_v6 = vmul.f32 %v1483_v51, %v1477_v49 }
 0x993   :  { %v1488_v54 = vpack.c.bf16 %v1487_v6, %v1486_v52 }
 0x995   :  { %1784 = vmatmul.mubr.msk.bf16.vlgmr.msra.gmra.mrb[36].mxu1 %vm1415_vm6, %v1488_v54 }
 0xa68   :  { %v1559_v55 = vpop.f32.mrb[36].mxu1 }
 0xa69   :  { %v1566_v56 = vadd.f32 %v1559_v55, %v2419_v0  ;;  %v1785_v57 = vpop.f32.mrb[37].mxu1 }
 0xa6a   :  { %v1562_v58 = vpop.f32.mrb[38].mxu1 }
 0xa6b   :  { %1568 = vst.msk [vmem:[#allocation8] sm:$0xff] %vm79_vm0, %v1566_v56  ;;  %v1567_v59 = vadd.f32 %v1562_v58, %v2421_v4  ;;  %v1786_v41 = vpop.f32.mrb[39].mxu1 }
 0xa6d   :  { %1569 = vst.msk [vmem:[#allocation8 + $0x8] sm:$0xff] %vm79_vm0, %v1567_v59 }
 0xa6e   :  { %2007 = shalt.err (!%p2004_p0)
}
 0xa6f   :  { %s2008_s1 = scalar_lea.hbm %s2488_s6, 256 }
 0xa70   :  { %p2009_p1 = scmp.ne.s32.totalorder %s2488_s6, %s2008_s1  ;;  %p2012_p2 = scmp.lt.u32.totalorder %s2008_s1, %s2488_s6 }
 0xa72   :  { %p2014_p3 = pnand %p2012_p2, %p2009_p1 }
 0xa74   :  { %2017 = shalt.err (!%p2014_p3)
}
 0xa75   :  { %1581 = dma.vmem_to_hbm [thread:$0]  %s1576_s17, 256, %s2488_s6, [#allocation4], %s2026_s9, %s2026_s9, %s2027_s10  }
 0xa76   :  { %2022 = dma.done.wait [#allocation4], 256  }
 0xa77   :  { %2023 = vsyncadd [#allocation4], 4294967040 }
 0xa78   :  { %1585 = vsyncpa [#allocation3], 1 }
 0xa79   :  { %1586 = vsyncpa [#allocation6], 1 }
 0xa7a   :  { %1587 = vsyncpa [#allocation4], 1 }

</bundles_post_ra>
